<compile_context>
chip_gen: v7x
topology: tpu7x:2x2x1
jax: 0.10.0
libtpu: 0.0.40
codegen_flags: <defaults>
</compile_context>

<pallas_src>
import functools

import jax
import jax.numpy as jnp
from jax.experimental import pallas as pl
from jax.experimental.pallas import tpu as pltpu


# ----------------------------------------------------------------------------- kernel
def _kl_kernel(pred_ref, tgt_ref, wt_ref, out_ref, acc_ref, *,
               npix, tile_n, tiles_per_core, mask_threshold, eps, needs_mask):
    """Grid = (B, n_core, tiles_per_core).
    One step: reduced = W^T @ pred, select true-class prob, -log, accumulate per lane."""
    c = pl.program_id(1)
    j = pl.program_id(2)
    logical = c * tiles_per_core + j                # logical pixel-tile index

    pred = pred_ref[0].astype(jnp.float32)          # (C_in,  TILE_N) channels on sublanes
    tgt = tgt_ref[0].astype(jnp.float32)            # (C_out, TILE_N)
    w_t = wt_ref[...].astype(jnp.float32)           # (C_out, C_in)

    reduced = jnp.dot(w_t, pred, preferred_element_type=jnp.float32)   # (C_out, TILE_N)

    # One-hot target => per-pixel KL = -log(p_true + eps) + log1p(eps).
    # (The scalar log1p(eps) correction is added in the wrapper.)
    p_true = jnp.sum(tgt * reduced, axis=0, keepdims=True)             # (1, TILE_N)
    contrib = -jnp.log(p_true + jnp.float32(eps))                      # (1, TILE_N)

    if not needs_mask:
        @pl.when(j == 0)
        def _():                                    # first step: store, no zero-fill pass
            acc_ref[...] = contrib

        @pl.when(j > 0)
        def _():
            acc_ref[...] += contrib
    else:
        in_body = logical < mask_threshold          # tiles fully inside [0, npix)

        @pl.when(jnp.logical_and(j == 0, in_body))
        def _():
            acc_ref[...] = contrib

        @pl.when(jnp.logical_and(j > 0, in_body))
        def _():
            acc_ref[...] += contrib

        in_tail = jnp.logical_not(in_body)          # ragged tail / fully-OOB core-split tiles

        @pl.when(jnp.logical_and(j == 0, in_tail))
        def _():
            pos = logical * tile_n + jax.lax.broadcasted_iota(jnp.int32, (1, tile_n), 1)
            acc_ref[...] = jnp.where(pos < npix, contrib, jnp.float32(0.0))

        @pl.when(jnp.logical_and(j > 0, in_tail))
        def _():
            pos = logical * tile_n + jax.lax.broadcasted_iota(jnp.int32, (1, tile_n), 1)
            acc_ref[...] += jnp.where(pos < npix, contrib, jnp.float32(0.0))

    @pl.when(j == pl.num_programs(2) - 1)
    def _finalize():
        total = jnp.sum(acc_ref[...])               # single tree-reduce per (batch, core)
        out_ref[...] = jnp.full((1, 1, 1, 128), total, dtype=jnp.float32)


# ----------------------------------------------------------------------------- helpers
def _iid_loss(x_out, x_tf_out, lamb=1.0):
    # TODO(synk): IIDLoss source not included in the spec; standard IIC formulation used.
    p_i_j = x_out.T @ x_tf_out                      # joint over rows, (K, K)
    p_i_j = (p_i_j + p_i_j.T) / 2.0
    p_i_j = p_i_j / jnp.sum(p_i_j)
    p_i = jnp.sum(p_i_j, axis=1, keepdims=True)     # (K, 1)
    p_j = jnp.sum(p_i_j, axis=0, keepdims=True)     # (1, K)
    e = 1e-10
    loss = -jnp.sum(p_i_j * (jnp.log(p_i_j + e)
                             - lamb * jnp.log(p_j + e)
                             - lamb * jnp.log(p_i + e)))
    loss_no_lamb = -jnp.sum(p_i_j * (jnp.log(p_i_j + e)
                                     - jnp.log(p_j + e)
                                     - jnp.log(p_i + e)))
    return loss, loss_no_lamb


def _translate_softmax(translate_param, c_out):
    diag = jnp.eye(c_out, dtype=jnp.float32) * 30.0
    if translate_param.shape[0] > 0:
        full = jnp.concatenate([diag, translate_param.astype(jnp.float32)], axis=0)
    else:
        full = diag
    return jax.nn.softmax(full, axis=1)             # (C_in, C_out)


def _pad8(c):
    return ((c + 7) // 8) * 8


# ----------------------------------------------------------------------------- wrapper
def stricter_adaptive_over_segmented_loss_with_mi(
    predict_simplex: jax.Array,      # (B, C_in, H, W), rows sum to 1 along C_in
    onehot_target: jax.Array,        # (B, C_out, H, W), strictly one-hot along C_out
    translate_param: jax.Array,      # (C_in - C_out, C_out) learnable parameter
    *,
    mi_weight: float = 0.0,
    eps: float = 1e-16,
    max_tile_n: int = 131072,
    core_split: int = 2,
) -> jax.Array:
    b, c_in, h, w = predict_simplex.shape
    _, c_out, _, _ = onehot_target.shape
    assert c_in >= c_out

    # --- tiny parameter glue (matches the torch module; scale_grad is identity fwd) ---
    w_soft = _translate_softmax(translate_param, c_out)   # (C_in, C_out)
    w_t = w_soft.T                                        # (C_out, C_in) for W^T @ pred

    # --- activations: free reshapes, channels stay contiguous on the sublane axis ---
    npix = h * w
    pred3 = predict_simplex.reshape(b, c_in, npix)
    tgt3 = onehot_target.reshape(b, c_out, npix)

    # --- generation-aware VMEM budget (48 MiB on 128-MiB v5e/v6e, 24 MiB on 64-MiB v7x) ---
    try:
        vmem_cap = int(getattr(pltpu.get_tpu_info(), "vmem_capacity_bytes",
                               128 * 1024 * 1024))
    except Exception:
        vmem_cap = 128 * 1024 * 1024
    budget_bytes = (vmem_cap * 3) // 8

    # Per-pixel VMEM bytes, counting sublane padding (blocks pad to 8 sublanes) and
    # in-kernel temporaries (reduced + p_true/contrib/mask rows).
    bytes_per_px = 4 * (2 * _pad8(c_in) + 2 * _pad8(c_out)    # double-buffered inputs
                        + _pad8(1)                            # accumulator row
                        + _pad8(c_out) + 3 * _pad8(1))        # temporaries
    cap = min(max_tile_n, max(128, (budget_bytes // bytes_per_px) // 128 * 128))
    tile_n = npix if npix <= cap else cap                     # full-dim block or 128-multiple
    grid_n = pl.cdiv(npix, tile_n)

    # --- core-split of the pixel axis (keeps both v7x TensorCores busy at B == 1) ---
    n_core = core_split if grid_n >= 2 else 1
    tiles_per_core = pl.cdiv(grid_n, n_core)
    mask_threshold = npix // tile_n                           # first logical tile needing a mask
    needs_mask = (npix % tile_n != 0) or (tiles_per_core * n_core != grid_n)
    last_block = grid_n - 1

    def _tile_idx(c, j):
        # clamp fully-OOB tiles of an uneven core split onto a valid block;
        # their contribution is zeroed in-kernel by the lane mask.
        return jnp.minimum(c * tiles_per_core + j, last_block)

    kernel = functools.partial(
        _kl_kernel, npix=npix, tile_n=tile_n, tiles_per_core=tiles_per_core,
        mask_threshold=mask_threshold, eps=eps, needs_mask=needs_mask)

    vmem_limit = min(vmem_cap, budget_bytes * 2)

    partials = pl.pallas_call(
        kernel,
        out_shape=jax.ShapeDtypeStruct((b, n_core, 1, 128), jnp.float32),
        grid_spec=pltpu.PrefetchScalarGridSpec(
            num_scalar_prefetch=0,
            grid=(b, n_core, tiles_per_core),
            in_specs=[
                pl.BlockSpec((1, c_in, tile_n),
                             lambda bi, c, j: (bi, 0, _tile_idx(c, j))),     # pred tile
                pl.BlockSpec((1, c_out, tile_n),
                             lambda bi, c, j: (bi, 0, _tile_idx(c, j))),     # one-hot tile
                pl.BlockSpec((c_out, c_in), lambda bi, c, j: (0, 0)),        # W^T (resident)
            ],
            out_specs=pl.BlockSpec((1, 1, 1, 128),
                                   lambda bi, c, j: (bi, c, 0, 0)),          # per-(batch,core) partial
            scratch_shapes=[pltpu.VMEM((1, tile_n), jnp.float32)],           # per-lane accumulator
        ),
        compiler_params=pltpu.CompilerParams(
            dimension_semantics=("parallel", "parallel", "arbitrary"),
            vmem_limit_bytes=vmem_limit,
        ),
    )(pred3, tgt3, w_t)

    kl_sum = jnp.sum(partials[:, :, 0, 0])
    # + log1p(eps) restores exact parity with -t*log((p+eps)/(t+eps)) for one-hot t.
    kl_loss = kl_sum / jnp.float32(b * npix) + jnp.log1p(jnp.float32(eps))

    mi_loss = jnp.float32(0.0)
    if translate_param.shape[0] > 0:                      # needs_optimize
        mi_loss, _ = _iid_loss(w_soft, w_soft)
    return kl_loss + jnp.float32(mi_weight) * mi_loss


# ----------------------------------------------------------------------------- reference
def _reference_loss(predict_simplex, onehot_target, translate_param, mi_weight, eps=1e-16):
    """Pure-JAX reference mirroring the PyTorch forward (full KL formula)."""
    c_out = onehot_target.shape[1]
    w_soft = _translate_softmax(translate_param, c_out)
    reduced = jnp.einsum("bchw,co->bohw", predict_simplex, w_soft)
    kl = -onehot_target * jnp.log((reduced + eps) / (onehot_target + eps))
    loss = kl.sum(axis=1).mean()
    mi = jnp.float32(0.0)
    if translate_param.shape[0] > 0:
        mi, _ = _iid_loss(w_soft, w_soft)
    return loss + jnp.float32(mi_weight) * mi


# ----------------------------------------------------------------------------- demo
if __name__ == "__main__":
    key = jax.random.PRNGKey(0)
    B, C_IN, C_OUT = 2, 8, 4
    MI_WEIGHT = 0.1

    def make_inputs(k, hw):
        k1, k2, k3 = jax.random.split(k, 3)
        logits = jax.random.normal(k1, (B, C_IN, hw, hw), dtype=jnp.float32)
        pred = jax.nn.softmax(logits, axis=1)                         # simplex along C_in
        labels = jax.random.randint(k2, (B, hw, hw), 0, C_OUT)
        onehot = jax.nn.one_hot(labels, C_OUT, axis=1, dtype=jnp.float32)
        param = 0.1 * jax.random.normal(k3, (C_IN - C_OUT, C_OUT), dtype=jnp.float32)
        return pred, onehot, param

    # Case 1: single tile per batch element (no core split, no masking).
    pred, onehot, param = make_inputs(key, 16)
    loss = stricter_adaptive_over_segmented_loss_with_mi(
        pred, onehot, param, mi_weight=MI_WEIGHT)
    loss = jax.block_until_ready(loss)
    ref = jax.block_until_ready(_reference_loss(pred, onehot, param, MI_WEIGHT))
    assert jnp.allclose(loss, ref, rtol=1e-5, atol=1e-5), (loss, ref)

    # Case 2: multi-tile accumulation + core split + ragged tail + fully-OOB clamped tile
    # (npix=324, tile=128 -> grid_n=3, n_core=2, tiles_per_core=2).
    pred2, onehot2, param2 = make_inputs(jax.random.PRNGKey(1), 18)
    loss2 = stricter_adaptive_over_segmented_loss_with_mi(
        pred2, onehot2, param2, mi_weight=MI_WEIGHT, max_tile_n=128)
    loss2 = jax.block_until_ready(loss2)
    ref2 = jax.block_until_ready(_reference_loss(pred2, onehot2, param2, MI_WEIGHT))
    assert jnp.allclose(loss2, ref2, rtol=1e-5, atol=1e-5), (loss2, ref2)

    print("KERNEL_OK")
</pallas_src>

<mosaic_0001>
module attributes {stable_mosaic.version = 11 : i64} {
  func.func @_kl_kernel(%arg0: i32, %arg1: i32, %arg2: i32, %arg3: memref<1x8x256xf32, #tpu.memory_space<vmem>>, %arg4: memref<1x4x256xf32, #tpu.memory_space<vmem>>, %arg5: memref<4x8xf32, #tpu.memory_space<vmem>>, %arg6: memref<1x1x1x128xf32, #tpu.memory_space<vmem>>, %arg7: memref<1x256xf32, #tpu.memory_space<vmem>>) attributes {dimension_semantics = [#tpu.dimension_semantics<parallel>, #tpu.dimension_semantics<parallel>, #tpu.dimension_semantics<arbitrary>], iteration_bounds = array<i64: 2, 1, 1>, scalar_prefetch = 0 : i64, scratch_operands = 1 : i64, tpu.core_type = #tpu.core_type<tc>, window_params = [{transform_indices = @transform_0, window_bounds = array<i64: 1, 8, 256>}, {transform_indices = @transform_1, window_bounds = array<i64: 1, 4, 256>}, {pipeline_mode = #tpu.pipeline_mode<synchronous>, transform_indices = @transform_2, window_bounds = array<i64: 4, 8>}, {transform_indices = @transform_3, window_bounds = array<i64: 1, 1, 1, 128>}]} {
    %c0 = arith.constant 0 : index
    %c0_0 = arith.constant 0 : index
    %c0_1 = arith.constant 0 : index
    %0 = vector.load %arg3[%c0, %c0_0, %c0_1] : memref<1x8x256xf32, #tpu.memory_space<vmem>>, vector<1x8x256xf32>
    %1 = vector.shape_cast %0 : vector<1x8x256xf32> to vector<8x256xf32>
    %c0_2 = arith.constant 0 : index
    %c0_3 = arith.constant 0 : index
    %c0_4 = arith.constant 0 : index
    %2 = vector.load %arg4[%c0_2, %c0_3, %c0_4] : memref<1x4x256xf32, #tpu.memory_space<vmem>>, vector<1x4x256xf32>
    %3 = vector.shape_cast %2 : vector<1x4x256xf32> to vector<4x256xf32>
    %c0_5 = arith.constant 0 : index
    %c0_6 = arith.constant 0 : index
    %4 = vector.load %arg5[%c0_5, %c0_6] : memref<4x8xf32, #tpu.memory_space<vmem>>, vector<4x8xf32>
    %cst = arith.constant dense<0.000000e+00> : vector<4x256xf32>
    %5 = tpu.matmul %4, %1, %cst {dimension_numbers = #tpu.dot_dimension_numbers<[1], [0], [0], [1], [0, 0, 1, 1], [], []>} : vector<4x8xf32>, vector<8x256xf32>, vector<4x256xf32> -> vector<4x256xf32>
    %6 = arith.mulf %3, %5 : vector<4x256xf32>
    %cst_7 = arith.constant dense<0.000000e+00> : vector<256xf32>
    %7 = vector.multi_reduction <add>, %6, %cst_7 [0] : vector<4x256xf32> to vector<256xf32>
    %8 = vector.shape_cast %7 : vector<256xf32> to vector<1x256xf32>
    %cst_8 = arith.constant 1.000000e-16 : f32
    %9 = vector.broadcast %cst_8 : f32 to vector<1x256xf32>
    %10 = arith.addf %8, %9 : vector<1x256xf32>
    %11 = math.log %10 : vector<1x256xf32>
    %cst_9 = arith.constant 0.000000e+00 : f32
    %12 = vector.broadcast %cst_9 : f32 to vector<1x256xf32>
    %13 = arith.subf %12, %11 : vector<1x256xf32>
    %c0_i32 = arith.constant 0 : i32
    %14 = arith.cmpi eq, %arg2, %c0_i32 : i32
    %15 = arith.extui %14 : i1 to i32
    %c0_i32_10 = arith.constant 0 : i32
    %16 = arith.cmpi ne, %15, %c0_i32_10 : i32
    scf.if %16 {
      %c0_15 = arith.constant 0 : index
      %c0_16 = arith.constant 0 : index
      %23 = vector.load %arg7[%c0_15, %c0_16] : memref<1x256xf32, #tpu.memory_space<vmem>>, vector<1x256xf32>
      tpu.vector_store %arg7[%c0_15, %c0_16], %13 {strides = array<i32>} : memref<1x256xf32, #tpu.memory_space<vmem>>, vector<1x256xf32>,
    } else {
    }
    %c0_i32_11 = arith.constant 0 : i32
    %17 = arith.cmpi sgt, %arg2, %c0_i32_11 : i32
    %18 = arith.extui %17 : i1 to i32
    %c0_i32_12 = arith.constant 0 : i32
    %19 = arith.cmpi ne, %18, %c0_i32_12 : i32
    scf.if %19 {
      %c0_15 = arith.constant 0 : index
      %c0_16 = arith.constant 0 : index
      %23 = vector.load %arg7[%c0_15, %c0_16] : memref<1x256xf32, #tpu.memory_space<vmem>>, vector<1x256xf32>
      %24 = arith.addf %23, %13 : vector<1x256xf32>
      %c0_17 = arith.constant 0 : index
      %c0_18 = arith.constant 0 : index
      %25 = vector.load %arg7[%c0_17, %c0_18] : memref<1x256xf32, #tpu.memory_space<vmem>>, vector<1x256xf32>
      tpu.vector_store %arg7[%c0_17, %c0_18], %24 {strides = array<i32>} : memref<1x256xf32, #tpu.memory_space<vmem>>, vector<1x256xf32>,
    } else {
    }
    %c0_i32_13 = arith.constant 0 : i32
    %20 = arith.cmpi eq, %arg2, %c0_i32_13 : i32
    %21 = arith.extui %20 : i1 to i32
    %c0_i32_14 = arith.constant 0 : i32
    %22 = arith.cmpi ne, %21, %c0_i32_14 : i32
    scf.if %22 {
      %c0_15 = arith.constant 0 : index
      %c0_16 = arith.constant 0 : index
      %23 = vector.load %arg7[%c0_15, %c0_16] : memref<1x256xf32, #tpu.memory_space<vmem>>, vector<1x256xf32>
      %24 = vector.shape_cast %23 : vector<1x256xf32> to vector<1x1x256xf32>
      %cst_17 = arith.constant dense<0.000000e+00> : vector<1xf32>
      %25 = vector.multi_reduction <add>, %24, %cst_17 [1, 2] : vector<1x1x256xf32> to vector<1xf32>
      %26 = vector.shape_cast %25 : vector<1xf32> to vector<1x1x1xf32>
      %27 = vector.extract %26[0, 0, 0] : f32 from vector<1x1x1xf32>
      %28 = vector.broadcast %27 : f32 to vector<1x1x1x128xf32>
      %c0_18 = arith.constant 0 : index
      %c0_19 = arith.constant 0 : index
      %c0_20 = arith.constant 0 : index
      %c0_21 = arith.constant 0 : index
      %29 = vector.load %arg6[%c0_18, %c0_19, %c0_20, %c0_21] : memref<1x1x1x128xf32, #tpu.memory_space<vmem>>, vector<1x1x1x128xf32>
      tpu.vector_store %arg6[%c0_18, %c0_19, %c0_20, %c0_21], %28 {strides = array<i32>} : memref<1x1x1x128xf32, #tpu.memory_space<vmem>>, vector<1x1x1x128xf32>,
    } else {
    }
    return
  }
  func.func @transform_0(%arg0: i32, %arg1: i32, %arg2: i32) -> (i32, i32, i32) {
    %c1_i32 = arith.constant 1 : i32
    %0 = arith.muli %arg1, %c1_i32 : i32
    %1 = arith.addi %0, %arg2 : i32
    %c0_i32 = arith.constant 0 : i32
    %2 = arith.minsi %1, %c0_i32 : i32
    %c0_i32_0 = arith.constant 0 : i32
    %c0_i32_1 = arith.constant 0 : i32
    return %arg0, %c0_i32_0, %2 : i32, i32, i32
  }
  func.func @transform_1(%arg0: i32, %arg1: i32, %arg2: i32) -> (i32, i32, i32) {
    %c1_i32 = arith.constant 1 : i32
    %0 = arith.muli %arg1, %c1_i32 : i32
    %1 = arith.addi %0, %arg2 : i32
    %c0_i32 = arith.constant 0 : i32
    %2 = arith.minsi %1, %c0_i32 : i32
    %c0_i32_0 = arith.constant 0 : i32
    %c0_i32_1 = arith.constant 0 : i32
    return %arg0, %c0_i32_0, %2 : i32, i32, i32
  }
  func.func @transform_2(%arg0: i32, %arg1: i32, %arg2: i32) -> (i32, i32) {
    %c0_i32 = arith.constant 0 : i32
    %c0_i32_0 = arith.constant 0 : i32
    %c0_i32_1 = arith.constant 0 : i32
    return %c0_i32, %c0_i32_0 : i32, i32
  }
  func.func @transform_3(%arg0: i32, %arg1: i32, %arg2: i32) -> (i32, i32, i32, i32) {
    %c0_i32 = arith.constant 0 : i32
    %c0_i32_0 = arith.constant 0 : i32
    %c0_i32_1 = arith.constant 0 : i32
    return %arg0, %arg1, %c0_i32, %c0_i32_0 : i32, i32, i32, i32
  }
}

</mosaic_0001>

<bundles_post_ra>
// kernel: tpu_custom_call.1
= control target key start
LH: loop header
LB: loop body
LE: loop exit
PB: predicated region body
PF: predicated region fallthrough
CT: control target
= control target key end

     0   :  { %s1196_s0 = inlined_call_operand.hbm [shape: f32[2,8,256], index: 0, kind: input, shape index: {}]   ;;  %s1197_s1 = inlined_call_operand.hbm [shape: f32[2,4,256], index: 1, kind: input, shape index: {}]   ;;  %s1198_s2 = inlined_call_operand.hbm [shape: f32[4,8], index: 2, kind: input, shape index: {}]   ;;  %s1199_s3 = inlined_call_operand.hbm [shape: f32[2,1,1,128], index: 3, kind: output, shape index: {}]  }
   0x1   :  { %1204 = sst [smem:[#allocation14_spill]] %s1196_s0 }
   0x2   :  { %8 = vsyncpa [#allocation4], 0 }
   0x3   :  { %10 = vsyncpa [#allocation4 + $0x1], 0 }
   0x4   :  { %11 = vsyncpa [#allocation7], 0 }
   0x5   :  { %13 = vsyncpa [#allocation7 + $0x1], 0 }
   0x6   :  { %14 = vsyncpa [#allocation5], 0 }
   0x7   :  { %16 = vsyncpa [#allocation5 + $0x1], 0  ;;  %s930_s12 = smov 0   ;;  %s932_s13 = smov 0  }
   0x8   :  { %s934_s14 = smov 0   ;;  %s936_s15 = smov 0  }
   0x9   :  { %s938_s16 = smov 0   ;;  %s940_s17 = smov 0  }
   0xa LB: > { %s961_s18 = sadd.s32 4294967295, %s902_s17   ;;  %s618_s19 = sadd.s32 4294967294, %s902_s17   ;;  %s902_s17 = sphi %s940_s17, %s22_s17   ;;  %s898_s16 = sphi %s938_s16, %s1228_s16   ;;  %s894_s15 = sphi %s936_s15, %s1227_s15   ;;  %s890_s14 = sphi %s934_s14, %s1226_s14   ;;  %s886_s13 = sphi %s932_s13, %s1225_s13   ;;  %s882_s12 = sphi %s930_s12, %s1224_s12  }
   0xb   : > { %s56_s20 = sadd.s32 1, %s890_s14  ;;  %p63_p0 = scmp.ne.s32.totalorder %s890_s14, %s886_s13 }
   0xc   : > { %p69_p1 = scmp.ne.s32.totalorder %s886_s13, %s882_s12  ;;  %p1200_p2 = scmp.eq.s32.totalorder %s961_s18, 0 }
   0xd   : > { %p150_p3 = scmp.eq.s32.totalorder %s961_s18, 1  ;;  %p156_p4 = scmp.eq.s32.totalorder %s618_s19, 1 }
   0xe   : > { %p973_p5 = por %p1200_p2, %p69_p1  ;;  %p619_p6 = scmp.ge.s32.totalorder %s902_s17, 1 }
   0xf   : > { %p981_p7 = por %p150_p3, %p63_p0  ;;  %p985_p8 = por %p156_p4, %p69_p1 }
  0x10   : > { %s1205_s21 = scalar_select %p973_p5, 1, 0 }
  0x11   : > { %s1206_s22 = scalar_select %p981_p7, 1, 0 }
  0x12   : > { %s1207_s23 = scalar_select %p985_p8, 1, 0 }
  0x13   : > { %p163_p9 = scmp.lt.s32.totalorder %s902_s17, 3  ;;  %s904_s25 = smov [#allocation8]  }
  0x14   : > { %s176_s26 = sshll.u32 %s904_s25, 4  ;;  %s41_s27 = sadd.s32 1, %s898_s16  ;;  %s177_s26 = int_to_ptr.vmem [resolvable:$true] %s176_s26 }
  0x15   : > { %p991_p11 = pnand %p619_p6, %p163_p9  ;;  %p64_p13 = scmp.eq.s32.totalorder %s902_s17, 0 }
  0x16   : > { %p1005_p1 = scmp.ge.s32.totalorder %s41_s27, 2  ;;  %s1018_s4 = sand.u32 1, %s890_s14  }
  0x17   : > { %s1208_s24 = scalar_select %p991_p11, 1, 0 }
  0x18   : > { %p650_p12 = pneg %p991_p11  ;;  %p1012_p4 = por %p64_p13, %p63_p0 }
  0x19   : > { %s1210_s29 = scalar_select %p1005_p1, 1, 0 }
  0x1a   : > { %p1001_p3 = pnand %p650_p12, %p1200_p2  ;;  %s724_s7 = scalar_lea.hbm %s1198_s2, 64 }
  0x1b   : > { %s1211_s30 = scalar_select %p1012_p4, 1, 0 }
  0x1c   : > { %p725_p9 = scmp.ne.s32.totalorder %s1198_s2, %s724_s7  ;;  %p726_p12 = pneg %p1001_p3 }
  0x1d   : > { %p731_p0 = scmp.lt.u32.totalorder %s724_s7, %s1198_s2 }
  0x1e   : > { %p727_p10 = pnand %p726_p12, %p725_p9 }
  0x20   : > { %p728_p2 = pneg %p727_p10 }
  0x22   : > { %p733_p13 = pnand %p731_p0, %p728_p2 }
  0x24   : > { %736 = shalt.err (!%p733_p13)
}
  0x25   : > { %s737_s19 = scalar_lea.vmem %s177_s26, 64  ;;  %p745_p5 = scmp.lt.s32.totalorder %s177_s26, %s177_s26 }
  0x26   : > { %p738_p6 = scmp.ne.s32.totalorder %s177_s26, %s737_s19  ;;  %p746_p11 = scmp.lt.s32.totalorder %s737_s19, %s737_s19 }
  0x28   : > { %p740_p8 = pnand %p738_p6, %p726_p12  ;;  %p747_p4 = por %p746_p11, %p745_p5 }
  0x2a   : > { %p741_p7 = pneg %p740_p8 }
  0x2c   : > { %p748_p1 = pnand %p747_p4, %p741_p7 }
  0x2e   : > { %751 = shalt.err (!%p748_p1)
}
  0x2f   : > { %653 = dma.hbm_to_vmem [thread:$0]  (!%p1001_p3), %s1198_s2, 64, %s177_s26, [#allocation7]  }
  0x30   : > { %p1212_p2 = scmp.ne.s32.totalorder %s1210_s29, 0  ;;  %s622_s28 = sshll.u32 %s1018_s4, 4 }
  0x31   : > { %s636_s7 = sshll.u32 %s898_s16, 8  ;;  %s1213_s0 = sld [smem:[#allocation14_spill]] }
  0x32   : > { %s1230_s27 = smov (%p1212_p2, %s41_s27), 0  ;;  %s191_s11 = scalar_lea.vmem [#allocation3], %s622_s28 }
  0x33   : > { %s51_s6 = ssub.s32 %s898_s16, %s1230_s27  ;;  %s204_s19 = sshll.u32 %s191_s11, 4  ;;  %s1054_s19 = int_to_ptr.vmem [resolvable:$true] %s204_s19 }
  0x34   : > { %p54_p5 = scmp.eq.s32.totalorder %s51_s6, 0  ;;  %p1214_p7 = scmp.ne.s32.totalorder %s1211_s30, 0 }
  0x35   : > { %p1215_p8 = scmp.lt.s32.totalorder %s902_s17, 2  ;;  %s211_s25 = sand.u32 1, %s902_s17  }
  0x36   : > { %s1052_s26 = scalar_select %p54_p5, %s890_s14, %s56_s20  }
  0x37   : > { %s1047_s10 = scalar_lea.hbm %s1213_s0, %s636_s7  ;;  %p1060_p10 = pnand %p1215_p8, %p1214_p7 }
  0x38   : > { %s625_s5 = sshll.u32 %s1018_s4, 3  ;;  %s188_s6 = scalar_lea.sflag [#allocation4], %s1018_s4 }
  0x39   : > { %s752_s7 = scalar_lea.hbm %s1047_s10, 256  ;;  %p754_p3 = pneg %p1060_p10 }
  0x3a   : > { %p753_p11 = scmp.ne.s32.totalorder %s1047_s10, %s752_s7  ;;  %s757_s28 = scalar_lea.hbm %s1213_s0, 512 }
  0x3b   : > { %p758_p6 = scmp.lt.u32.totalorder %s1047_s10, %s1213_s0  ;;  %p759_p9 = scmp.lt.u32.totalorder %s757_s28, %s752_s7 }
  0x3c   : > { %p755_p1 = pnand %p754_p3, %p753_p11  ;;  %p761_p0 = scmp.lt.u32.totalorder %s752_s7, %s1047_s10 }
  0x3d   : > { %p760_p12 = por %p759_p9, %p758_p6 }
  0x3e   : > { %p756_p4 = pneg %p755_p1 }
  0x3f   : > { %p762_p13 = por %p761_p0, %p760_p12 }
  0x41   : > { %p763_p2 = pnand %p762_p13, %p756_p4 }
  0x43   : > { %766 = shalt.err (!%p763_p2)
}
  0x44   : > { %s767_s11 = scalar_lea.vmem %s1054_s19, 256  ;;  %s905_s20 = smov [#allocation3]  }
  0x45   : > { %p768_p5 = scmp.ne.s32.totalorder %s1054_s19, %s767_s11  ;;  %s772_s30 = sshll.u32 %s905_s20, 4  ;;  %s773_s30 = int_to_ptr.vmem [resolvable:$false] %s772_s30 }
  0x46   : > { %s774_s8 = scalar_lea.vmem %s773_s30, 512  ;;  %p775_p11 = scmp.lt.s32.totalorder %s1054_s19, %s773_s30 }
  0x47   : > { %p770_p7 = pnand %p768_p5, %p754_p3  ;;  %p776_p1 = scmp.lt.s32.totalorder %s774_s8, %s767_s11 }
  0x49   : > { %p771_p8 = pneg %p770_p7  ;;  %p777_p6 = por %p776_p1, %p775_p11 }
  0x4b   : > { %p778_p9 = pnand %p777_p6, %p771_p8 }
  0x4d   : > { %781 = shalt.err (!%p778_p9)
}
  0x4e   : > { %657 = dma.hbm_to_vmem [thread:$0]  (!%p1060_p10), %s1047_s10, 256, %s1054_s19, %s188_s6  }
  0x4f   : > { %s637_s7 = sshll.u32 %s898_s16, 7  ;;  %s215_s11 = scalar_lea.vmem [#allocation6], %s625_s5 }
  0x50   : > { %s1096_s20 = scalar_lea.hbm %s1197_s1, %s637_s7  ;;  %s228_s30 = sshll.u32 %s215_s11, 4  ;;  %s229_s30 = int_to_ptr.vmem [resolvable:$true] %s228_s30 }
  0x51   : > { %s212_s8 = scalar_lea.sflag [#allocation7], %s211_s25  ;;  %s782_s0 = scalar_lea.hbm %s1096_s20, 128 }
  0x52   : > { %p783_p4 = scmp.ne.s32.totalorder %s1096_s20, %s782_s0  ;;  %s787_s6 = scalar_lea.hbm %s1197_s1, 256 }
  0x53   : > { %p788_p13 = scmp.lt.u32.totalorder %s1096_s20, %s1197_s1  ;;  %p789_p2 = scmp.lt.u32.totalorder %s787_s6, %s782_s0 }
  0x54   : > { %p785_p12 = pnand %p783_p4, %p754_p3  ;;  %p791_p7 = scmp.lt.u32.totalorder %s782_s0, %s1096_s20 }
  0x55   : > { %p790_p5 = por %p789_p2, %p788_p13 }
  0x56   : > { %p786_p0 = pneg %p785_p12 }
  0x57   : > { %p792_p8 = por %p791_p7, %p790_p5 }
  0x59   : > { %p793_p11 = pnand %p792_p8, %p786_p0 }
  0x5b   : > { %796 = shalt.err (!%p793_p11)
}
  0x5c   : > { %s797_s25 = scalar_lea.vmem %s229_s30, 128  ;;  %s906_s5 = smov [#allocation6]  }
  0x5d   : > { %p798_p1 = scmp.ne.s32.totalorder %s229_s30, %s797_s25  ;;  %s802_s28 = sshll.u32 %s906_s5, 4  ;;  %s803_s28 = int_to_ptr.vmem [resolvable:$false] %s802_s28 }
  0x5e   : > { %s804_s9 = scalar_lea.vmem %s803_s28, 256  ;;  %p805_p4 = scmp.lt.s32.totalorder %s229_s30, %s803_s28 }
  0x5f   : > { %p800_p6 = pnand %p798_p1, %p754_p3  ;;  %p806_p12 = scmp.lt.s32.totalorder %s804_s9, %s797_s25 }
  0x61   : > { %p801_p9 = pneg %p800_p6  ;;  %p807_p2 = por %p806_p12, %p805_p4 }
  0x63   : > { %p808_p13 = pnand %p807_p2, %p801_p9 }
  0x65   : > { %811 = shalt.err (!%p808_p13)
}
  0x66   : > { %660 = dma.hbm_to_vmem [thread:$0]  (!%p1060_p10), %s1096_s20, 128, %s229_s30, %s212_s8  }
  0x67   : > { %p1217_p0 = scmp.ne.s32.totalorder %s1208_s24, 0 }
  0x68   : > { %s1124_s0 = sand.u32 (!%p1217_p0), 1, %s886_s13   ;;  %p1218_p3 = scmp.ne.s32.totalorder (!%p1217_p0), %s1205_s21, 0 }
  0x69   : > { %237 = sbr.rel (%p1217_p0) target bundleno = 609 (0x261), region = 32  ;;  %s629_s11 = sshll.u32 (!%p1217_p0), %s1124_s0, 4 }
  0x6a   : > { %s240_s10 = scalar_lea.sflag (!%p1217_p0), [#allocation4], %s1124_s0  ;;  %s243_s19 = scalar_lea.vmem (!%p1217_p0), [#allocation3], %s629_s11 }
  0x70   : > { %865 = dma.done.wait (%p1218_p3), %s240_s10, 256  }
  0x71   : > { %867 = vsyncadd (%p1218_p3), %s240_s10, 4294967040  ;;  %s248_s29 = sand.u32 1, %s961_s18   ;;  %s630_s24 = sshll.u32 %s1124_s0, 3 }
  0x72   : > { %s249_s20 = scalar_lea.sflag [#allocation7], %s248_s29  ;;  %s252_s30 = scalar_lea.vmem [#allocation6], %s630_s24 }
  0x73   : > { %869 = dma.done.wait (%p1218_p3), %s249_s20, 128  }
  0x74   : > { %871 = vsyncadd (%p1218_p3), %s249_s20, 4294967168  ;;  %p1219_p10 = scmp.eq.s32.totalorder %s961_s18, 0 }
  0x76   : > { %873 = dma.done.wait (%p1219_p10), [#allocation7], 64   ;;  %p1220_p5 = pmov %p1219_p10 }
  0x77   : > { %v907_v0 = vmov 0.0   ;;  %v292_v1 = vld [vmem:[%s243_s19 + $0x8] sm:$0xff]  ;;  %v291_v2 = vld [vmem:[%s243_s19] sm:$0xff]  ;;  %vm295_vm0 = vcmask 64512   ;;  %vm378_vm1 = vcmask 1043456   ;;  %v411_v28 = vlaneseq  ;;  %s282_s18 = scalar_lea.vmem [#allocation9], %s1124_s0 }
  0x78   : > { %875 = vsyncadd (%p1220_p5), [#allocation7], 4294967232  ;;  %363 = vmatprep.mubr.f32.mxu0 %v907_v0  ;;  %v294_v3 = vld [vmem:[#allocation8] sm:$0xf]  ;;  %299 = vmatprep.subr.mxu0 %v292_v1  ;;  %v293_v5 = vld [vmem:[%s252_s30] sm:$0xff]  ;;  %vm472_vm3 = vcmask 1040384  }
  0x79   : > { %300 = vmatpush1.msra.mxu0 %v291_v2  ;;  %v908_v26 = vmov 1966171168   ;;  %v412_v32 = vshrl.u32 %v411_v28, 7  ;;  %vm425_vm2 = vcmp.lt.s32.totalorder %v411_v28, 256  ;;  %s501_s21 = sshll.u32 %s282_s18, 4  ;;  %s633_s8 = sshll.u32 %s894_s15, 4  ;;  %s1144_s21 = int_to_ptr.vmem [resolvable:$true] %s501_s21 }
  0x7a   : > { %632 = vmatmul.mubr.msk.f32.vlgmr.msra.gmra.mrb[0].mxu0 %vm295_vm0, %v294_v3  ;;  %v409_v27 = vunpack.c.l.s4 %v908_v26  ;;  %s1149_s25 = scalar_lea.hbm %s1199_s3, %s633_s8  ;;  %s488_s5 = scalar_lea.sflag [#allocation5], %s1124_s0 }
  0x7b   : > { %v464_v41 = vsub.s32 0, %v412_v32  ;;  %v468_v42 = vsub.s32 1, %v412_v32  ;;  %s812_s28 = scalar_lea.vmem %s1144_s21, 16  ;;  %p1221_p8 = scmp.ne.s32.totalorder %s1206_s22, 0 }
  0x7c   : > { %v410_v31 = vunpack.c.0.s8 %v409_v27  ;;  %p813_p7 = scmp.ne.s32.totalorder %s1144_s21, %s812_s28  ;;  %s909_s15 = smov [#allocation9]  }
  0x7d   : > { %s816_s9 = sshll.u32 %s909_s15, 4  ;;  %s817_s9 = int_to_ptr.vmem [resolvable:$false] %s816_s9 }
  0x7e   : > { %v413_v37 = vsub.s32 %v410_v31, %v412_v32  ;;  %p814_p11 = pnand %p813_p7, %p1221_p8  ;;  %s818_s11 = scalar_lea.vmem %s817_s9, 32 }
  0x7f   : > { %p819_p6 = scmp.lt.s32.totalorder %s1144_s21, %s817_s9  ;;  %p820_p9 = scmp.lt.s32.totalorder %s818_s11, %s812_s28 }
  0x80   : > { %p815_p1 = pneg %p814_p11 }
  0x81   : > { %p821_p4 = por %p820_p9, %p819_p6 }
  0x83   : > { %p822_p12 = pnand %p821_p4, %p815_p1 }
 0x14d   : > { %v365_v4 = vpop.f32.mrb[0].mxu0 }
 0x14e   : > { %v367_v6 = vpop.f32.mrb[1].mxu0 }
 0x14f   : > { %v372_v7 = vcombine.low %v365_v4, %v367_v6 }
 0x151   : > { %v374_v8 = vmul.f32 %v372_v7, %v293_v5 }
 0x153   : > { %v376_v9 = vcombine.high %v374_v8, %v374_v8  ;;  %v379_v10 = vsel %vm378_vm1, %v374_v8, 0.0 }
 0x154   : > { %v380_v11 = vrot.slane %v379_v10, 4 }
 0x155   : > { %v386_v12 = vsel %vm378_vm1, %v376_v9, 0.0 }
 0x156   : > { %v381_v13 = vadd.f32 %v380_v11, %v379_v10  ;;  %v387_v14 = vrot.slane %v386_v12, 4 }
 0x158   : > { %v382_v15 = vrot.slane %v381_v13, 2  ;;  %v388_v16 = vadd.f32 %v387_v14, %v386_v12 }
 0x15a   : > { %v383_v17 = vadd.f32 %v382_v15, %v381_v13  ;;  %v389_v18 = vrot.slane %v388_v16, 2 }
 0x15c   : > { %v384_v19 = vrot.slane %v383_v17, 1  ;;  %v390_v20 = vadd.f32 %v389_v18, %v388_v16 }
 0x15e   : > { %v385_v21 = vadd.f32 %v384_v19, %v383_v17  ;;  %v391_v22 = vrot.slane %v390_v20, 1 }
 0x160   : > { %v392_v23 = vadd.f32 %v391_v22, %v390_v20  ;;  %v393_v24 = vadd.f32 1e-16, %v385_v21 }
 0x162   : > { %v394_v25 = vadd.f32 1e-16, %v392_v23  ;;  %720 = vlog2.f32 %v393_v24 }
 0x164   : > { %722 = vlog2.f32 %v394_v25 }
 0x16c   : > { %v721_v29 = vpop.eup %720 }
 0x16d   : > { %v396_v30 = vmul.f32 0.6931472, %v721_v29 }
 0x16e   : > { %v723_v33 = vpop.eup %722 }
 0x16f   : > { %v398_v34 = vmul.f32 0.6931472, %v723_v33  ;;  %v399_v35 = vsub.f32 0.0, %v396_v30 }
 0x171   : > { %v400_v36 = vsub.f32 0.0, %v398_v34 }
 0x173   : > { %v407_v38 = vcombine.low %v399_v35, %v400_v36 }
 0x175   : > { %v414_v39 = vrot.slane %v407_v38, %v413_v37 }
 0x177   : > { %v421_v40 = vrot.slane %v414_v39, %v413_v37 }
 0x179   : > { %427 = vst.msk [vmem:[#allocation2] sm:$0x3] %vm425_vm2, %v421_v40 }
 0x180   : > { %v460_v43 = vld [vmem:[#allocation2] sm:$0x3] }
 0x181   : > { %v465_v44 = vrot.slane %v460_v43, %v464_v41  ;;  %v469_v45 = vrot.slane %v460_v43, %v468_v42 }
 0x183   : > { %v473_v46 = vsel %vm472_vm3, %v465_v44, 0.0  ;;  %v474_v47 = vsel %vm472_vm3, %v469_v45, 0.0 }
 0x184   : > { %v475_v48 = vadd.f32 %v474_v47, %v473_v46 }
 0x186   : > { %476 = vadd.xlane.f32.xlu0 %v475_v48 }
 0x213   : > { %v477_v49 = vpop.xlane.xlu0 %476 }
 0x214   : > { %v478_v50 = vrot.slane %v477_v49, 4 }
 0x216   : > { %v479_v51 = vadd.f32 %v478_v50, %v477_v49 }
 0x218   : > { %v480_v52 = vrot.slane %v479_v51, 2 }
 0x21a   : > { %v481_v53 = vadd.f32 %v480_v52, %v479_v51 }
 0x21c   : > { %v482_v54 = vrot.slane %v481_v53, 1 }
 0x21e   : > { %v483_v55 = vadd.f32 %v482_v54, %v481_v53 }
 0x220   : > { %638 = vpush %v483_v55 }
 0x251   : > { %s639_s6 = spop %638 }
 0x252   : > { %v485_v56 = vstv %s639_s6 }
 0x253   : > { %486 = vst [vmem:[%s282_s18] sm:$0x1] %v485_v56 }
 0x254   : > { %825 = shalt.err (!%p822_p12)
}
 0x255   : > { %s826_s0 = scalar_lea.hbm %s1149_s25, 16  ;;  %s830_s29 = scalar_lea.hbm %s1199_s3, 32 }
 0x256   : > { %p827_p2 = scmp.ne.s32.totalorder %s1149_s25, %s826_s0  ;;  %p831_p3 = scmp.lt.u32.totalorder %s1149_s25, %s1199_s3 }
 0x257   : > { %p832_p10 = scmp.lt.u32.totalorder %s830_s29, %s826_s0  ;;  %p834_p7 = scmp.lt.u32.totalorder %s826_s0, %s1149_s25 }
 0x258   : > { %p828_p13 = pnand %p827_p2, %p1221_p8 }
 0x259   : > { %p833_p5 = por %p832_p10, %p831_p3 }
 0x25a   : > { %p829_p0 = pneg %p828_p13 }
 0x25b   : > { %p835_p11 = por %p834_p7, %p833_p5 }
 0x25d   : > { %p836_p1 = pnand %p835_p11, %p829_p0 }
 0x25f   : > { %839 = shalt.err (!%p836_p1)
}
 0x260   : > { %648 = dma.vmem_to_hbm [thread:$0]  (%p1221_p8), %s1144_s21, 16, %s1149_s25, %s488_s5  }
 0x261 PF: > { %s513_s30 = sand.u32 1, %s882_s12   ;;  %p1222_p6 = scmp.ne.s32.totalorder %s1207_s23, 0 }
 0x262   : > { %p1223_p9 = scmp.ge.s32.totalorder %s902_s17, 2  ;;  %s514_s18 = scalar_lea.sflag [#allocation5], %s513_s30 }
 0x264   : > { %p662_p4 = pnand %p1223_p9, %p1222_p6 }
 0x266   : > { %877 = dma.done.wait (!%p662_p4), %s514_s18, 16  }
 0x267   : > { %879 = vsyncadd (!%p662_p4), %s514_s18, 4294967280  ;;  %s22_s17 = sadd.s32 1, %s902_s17   ;;  %s1224_s12 = smov %s886_s13 }
 0x268   : > { %p19_p12 = scmp.ge.s32.totalorder %s22_s17, 4   ;;  %s1225_s13 = smov %s890_s14 }
 0x269   : > { %s1226_s14 = smov %s1052_s26  ;;  %s1227_s15 = smov %s898_s16 }
 0x26a   : > { %s1228_s16 = smov %s1230_s27  ;;  %21 = sbr.rel (!%p19_p12) target bundleno = 10 (0xa), region = 106 }
 0x271   :  { %518 = vsyncpa [#allocation4], 1 }
 0x272   :  { %520 = vsyncpa [#allocation4 + $0x1], 1 }
 0x273   :  { %521 = vsyncpa [#allocation7], 1 }
 0x274   :  { %523 = vsyncpa [#allocation7 + $0x1], 1 }
 0x275   :  { %524 = vsyncpa [#allocation5], 1 }
 0x276   :  { %526 = vsyncpa [#allocation5 + $0x1], 1 }

</bundles_post_ra>
